<compile_context>
chip_gen: v5e
topology: v5e:2x2
jax: 0.10.0
libtpu: 0.0.40
codegen_flags: <defaults>
</compile_context>

<pallas_src>
from functools import partial

import numpy as np
import jax
import jax.numpy as jnp
from jax import lax
from jax.experimental import pallas as pl
from jax.experimental.pallas import tpu as pltpu


def _round_up(x, m):
    return ((x + m - 1) // m) * m


# ----------------------------- Pallas kernel -------------------------------

def fused_kernel(u_ref, c_ref, a_ref, at_ref, o_mean_ref, o_cov_ref,
                 *, n_filters, howo, npad):
    # Grid = (B,); one batch element per step.
    # u_ref  : (1, Cin, HW)        -- mean input for this batch element
    # c_ref  : (1, Cin, HW, HW)    -- covariance input for this batch element
    # a_ref  : (N8, HW)            -- all filters stacked, rows zero-padded to mult of 8
    # at_ref : (HW, NPAD)          -- transpose, cols zero-padded to mult of 128 (shared
    #                                 by the mean matmul and the second cov matmul)
    # o_mean_ref : (1, 1, NPAD)    -- (sum_c u[b,c]) @ A^T, lane-dense
    # o_cov_ref  : (1, HoWo, NPAD) -- compact diag-block slab, lane-dense

    # ---- mean: channel sum (tiny sublane reduction) + one MXU pass ----
    us = jnp.sum(u_ref[0], axis=0, keepdims=True)                  # (1, HW)
    o_mean_ref[0] = jnp.dot(us, at_ref[...],
                            preferred_element_type=jnp.float32)    # (1, NPAD)

    # ---- cov: channel sum on VPU, then two matmuls ----
    cs = jnp.sum(c_ref[0], axis=0)                                 # (HW, HW)
    t = jnp.dot(a_ref[...], cs, preferred_element_type=jnp.float32)   # (N8, HW)
    r = jnp.dot(t, at_ref[...], preferred_element_type=jnp.float32)   # (N8, NPAD)

    # In-kernel diagonal-block extraction:
    #   slab[q2, i*HoWo + q1] = (A_i Cs A_i^T)[q2, q1] = r[i*HoWo + q2, i*HoWo + q1]
    # Each block keeps its lane offset (i*HoWo) -- only sublane moves, then one
    # unmasked lane-dense (HoWo, NPAD) store.
    blocks = [r[i * howo:(i + 1) * howo, i * howo:(i + 1) * howo]
              for i in range(n_filters)]
    pad_cols = npad - n_filters * howo
    if pad_cols:
        blocks.append(jnp.zeros((howo, pad_cols), jnp.float32))
    o_cov_ref[0] = jnp.concatenate(blocks, axis=-1)


# ------------------------------ JAX wrapper --------------------------------

def build_conv_matrices(w, H, W, stride):
    """Dense matrix form of a VALID conv with a (K,K) filter, per output channel.

    Uses numpy, so `w` must be a concrete array (do not jit with a traced w).
    """
    w_np = np.asarray(w, dtype=np.float32)
    O, K, _ = w_np.shape
    Ho = (H - K) // stride + 1
    Wo = (W - K) // stride + 1
    A = np.zeros((O, Ho, Wo, H, W), dtype=np.float32)
    for y in range(Ho):
        for x in range(Wo):
            A[:, y, x, y * stride:y * stride + K, x * stride:x * stride + K] = w_np
    return jnp.asarray(A.reshape(O, Ho * Wo, H * W)), Ho, Wo


def moment_conv2d(u, C, w, stride):
    B, Cin, H, W = u.shape
    O, K, _ = w.shape
    A3, Ho, Wo = build_conv_matrices(w, H, W, stride)       # (O, HoWo, HW)
    HW, HoWo = H * W, Ho * Wo
    N = O * HoWo
    N8 = _round_up(N, 8)        # matmul M dim: sublane padding only
    NPAD = _round_up(N, 128)    # output lane dim: lane-dense padding

    u_r = u.reshape(B, Cin, HW).astype(jnp.float32)
    C_r = C.reshape(B, Cin, HW, HW).astype(jnp.float32)

    A_flat = A3.reshape(N, HW)
    A_pad = jnp.zeros((N8, HW), jnp.float32).at[:N, :].set(A_flat)        # (N8, HW)
    At_pad = jnp.zeros((HW, NPAD), jnp.float32).at[:, :N].set(A_flat.T)   # (HW, NPAD)

    kernel = partial(fused_kernel, n_filters=O, howo=HoWo, npad=NPAD)

    mean_pad, cov_pad = pl.pallas_call(
        kernel,
        out_shape=(
            jax.ShapeDtypeStruct((B, 1, NPAD), jnp.float32),
            jax.ShapeDtypeStruct((B, HoWo, NPAD), jnp.float32),
        ),
        grid_spec=pltpu.PrefetchScalarGridSpec(
            num_scalar_prefetch=0,
            grid=(B,),
            in_specs=[
                pl.BlockSpec((1, Cin, HW), lambda b: (b, 0, 0)),
                pl.BlockSpec((1, Cin, HW, HW), lambda b: (b, 0, 0, 0)),
                pl.BlockSpec((N8, HW), lambda b: (0, 0)),
                pl.BlockSpec((HW, NPAD), lambda b: (0, 0)),
            ],
            out_specs=[
                pl.BlockSpec((1, 1, NPAD), lambda b: (b, 0, 0)),
                pl.BlockSpec((1, HoWo, NPAD), lambda b: (b, 0, 0)),
            ],
        ),
        compiler_params=pltpu.CompilerParams(
            dimension_semantics=("parallel",),          # v7x: split batch across TCs
            vmem_limit_bytes=32 * 1024 * 1024),
    )(u_r, C_r, A_pad, At_pad)

    out_mean = mean_pad[:, 0, :N].reshape(B, O, Ho, Wo)
    # cov_pad[b, q2, i*HoWo + q1]  ->  (B, O, Ho, Wo, Ho, Wo)
    out_cov = jnp.transpose(
        cov_pad[:, :, :N].reshape(B, HoWo, O, HoWo), (0, 2, 1, 3)
    ).reshape(B, O, Ho, Wo, Ho, Wo)

    return out_mean, out_cov


# --------------------------- pure-JAX reference ----------------------------

def moment_conv2d_ref(u, C, w, stride):
    B, Cin, H, W = u.shape
    O, K, _ = w.shape
    Ho = (H - K) // stride + 1
    Wo = (W - K) // stride + 1

    u_sum = u.sum(axis=1)[:, None]                                     # (B,1,H,W)
    mean = lax.conv_general_dilated(u_sum, w[:, None], (stride, stride), 'VALID')

    C_sum = C.sum(axis=1)                                              # (B,H,W,H,W)
    covs = []
    for i in range(O):
        wi = w[i][None, None]
        x = C_sum.reshape(B * H * W, 1, H, W)
        x = lax.conv_general_dilated(x, wi, (stride, stride), 'VALID')
        x = x.reshape(B, H, W, Ho, Wo)
        x = jnp.transpose(x, (0, 3, 4, 1, 2)).reshape(B * Ho * Wo, 1, H, W)
        x = lax.conv_general_dilated(x, wi, (stride, stride), 'VALID')
        x = x.reshape(B, Ho, Wo, Ho, Wo)
        covs.append(jnp.transpose(x, (0, 3, 4, 1, 2)))
    cov = jnp.stack(covs, axis=1)
    return mean, cov


# ---------------------------------- main -----------------------------------

if __name__ == "__main__":
    B, Cin, O = 2, 4, 3
    H = W = 9
    K, stride = 3, 2

    key = jax.random.PRNGKey(0)
    k_u, k_c, k_w = jax.random.split(key, 3)

    u = jax.random.normal(k_u, (B, Cin, H, W), dtype=jnp.float32)
    C = jax.random.normal(k_c, (B, Cin, H, W, H, W), dtype=jnp.float32)
    # Deterministic stand-in for Conv2d(1,1,K,K) default init: U(-1/K, 1/K)
    w = jax.random.uniform(k_w, (O, K, K), dtype=jnp.float32,
                           minval=-1.0 / K, maxval=1.0 / K)

    out_mean, out_cov = moment_conv2d(u, C, w, stride)
    jax.block_until_ready((out_mean, out_cov))

    ref_mean, ref_cov = moment_conv2d_ref(u, C, w, stride)
    assert out_mean.shape == ref_mean.shape
    assert out_cov.shape == ref_cov.shape
    assert jnp.allclose(out_mean, ref_mean, rtol=1e-4, atol=1e-4)
    assert jnp.allclose(out_cov, ref_cov, rtol=1e-4, atol=1e-4)

    print("KERNEL_OK")
</pallas_src>

<mosaic_0001>
module attributes {stable_mosaic.version = 11 : i64} {
  func.func @fused_kernel(%arg0: i32, %arg1: memref<1x4x81xf32, #tpu.memory_space<vmem>>, %arg2: memref<1x4x81x81xf32, #tpu.memory_space<vmem>>, %arg3: memref<48x81xf32, #tpu.memory_space<vmem>>, %arg4: memref<81x128xf32, #tpu.memory_space<vmem>>, %arg5: memref<1x1x128xf32, #tpu.memory_space<vmem>>, %arg6: memref<1x16x128xf32, #tpu.memory_space<vmem>>) attributes {dimension_semantics = [#tpu.dimension_semantics<parallel>], iteration_bounds = array<i64: 2>, scalar_prefetch = 0 : i64, scratch_operands = 0 : i64, tpu.core_type = #tpu.core_type<tc>, window_params = [{transform_indices = @transform_0, window_bounds = array<i64: 1, 4, 81>}, {transform_indices = @transform_1, window_bounds = array<i64: 1, 4, 81, 81>}, {pipeline_mode = #tpu.pipeline_mode<synchronous>, transform_indices = @transform_2, window_bounds = array<i64: 48, 81>}, {pipeline_mode = #tpu.pipeline_mode<synchronous>, transform_indices = @transform_3, window_bounds = array<i64: 81, 128>}, {transform_indices = @transform_4, window_bounds = array<i64: 1, 1, 128>}, {transform_indices = @transform_5, window_bounds = array<i64: 1, 16, 128>}]} {
    %c0 = arith.constant 0 : index
    %c0_0 = arith.constant 0 : index
    %c0_1 = arith.constant 0 : index
    %0 = vector.load %arg1[%c0, %c0_0, %c0_1] : memref<1x4x81xf32, #tpu.memory_space<vmem>>, vector<1x4x81xf32>
    %1 = vector.shape_cast %0 : vector<1x4x81xf32> to vector<4x81xf32>
    %cst = arith.constant dense<0.000000e+00> : vector<81xf32>
    %2 = vector.multi_reduction <add>, %1, %cst [0] : vector<4x81xf32> to vector<81xf32>
    %3 = vector.shape_cast %2 : vector<81xf32> to vector<1x81xf32>
    %c0_2 = arith.constant 0 : index
    %c0_3 = arith.constant 0 : index
    %4 = vector.load %arg4[%c0_2, %c0_3] : memref<81x128xf32, #tpu.memory_space<vmem>>, vector<81x128xf32>
    %cst_4 = arith.constant dense<0.000000e+00> : vector<1x128xf32>
    %5 = tpu.matmul %3, %4, %cst_4 {dimension_numbers = #tpu.dot_dimension_numbers<[1], [0], [0], [1], [0, 0, 1, 1], [], []>} : vector<1x81xf32>, vector<81x128xf32>, vector<1x128xf32> -> vector<1x128xf32>
    %c0_5 = arith.constant 0 : index
    %c0_6 = arith.constant 0 : index
    %c0_7 = arith.constant 0 : index
    %6 = vector.load %arg5[%c0_5, %c0_6, %c0_7] : memref<1x1x128xf32, #tpu.memory_space<vmem>>, vector<1x1x128xf32>
    %7 = vector.shape_cast %6 : vector<1x1x128xf32> to vector<1x128xf32>
    %8 = vector.shape_cast %5 : vector<1x128xf32> to vector<1x1x128xf32>
    tpu.vector_store %arg5[%c0_5, %c0_6, %c0_7], %8 {strides = array<i32>} : memref<1x1x128xf32, #tpu.memory_space<vmem>>, vector<1x1x128xf32>,
    %c0_8 = arith.constant 0 : index
    %c0_9 = arith.constant 0 : index
    %c0_10 = arith.constant 0 : index
    %c0_11 = arith.constant 0 : index
    %9 = vector.load %arg2[%c0_8, %c0_9, %c0_10, %c0_11] : memref<1x4x81x81xf32, #tpu.memory_space<vmem>>, vector<1x4x81x81xf32>
    %10 = vector.shape_cast %9 : vector<1x4x81x81xf32> to vector<4x81x81xf32>
    %cst_12 = arith.constant dense<0.000000e+00> : vector<81x81xf32>
    %11 = vector.multi_reduction <add>, %10, %cst_12 [0] : vector<4x81x81xf32> to vector<81x81xf32>
    %c0_13 = arith.constant 0 : index
    %c0_14 = arith.constant 0 : index
    %12 = vector.load %arg3[%c0_13, %c0_14] : memref<48x81xf32, #tpu.memory_space<vmem>>, vector<48x81xf32>
    %cst_15 = arith.constant dense<0.000000e+00> : vector<48x81xf32>
    %13 = tpu.matmul %12, %11, %cst_15 {dimension_numbers = #tpu.dot_dimension_numbers<[1], [0], [0], [1], [0, 0, 1, 1], [], []>} : vector<48x81xf32>, vector<81x81xf32>, vector<48x81xf32> -> vector<48x81xf32>
    %c0_16 = arith.constant 0 : index
    %c0_17 = arith.constant 0 : index
    %14 = vector.load %arg4[%c0_16, %c0_17] : memref<81x128xf32, #tpu.memory_space<vmem>>, vector<81x128xf32>
    %cst_18 = arith.constant dense<0.000000e+00> : vector<48x128xf32>
    %15 = tpu.matmul %13, %14, %cst_18 {dimension_numbers = #tpu.dot_dimension_numbers<[1], [0], [0], [1], [0, 0, 1, 1], [], []>} : vector<48x81xf32>, vector<81x128xf32>, vector<48x128xf32> -> vector<48x128xf32>
    %16 = vector.extract_strided_slice %15 {offsets = [0, 0], sizes = [16, 16], strides = [1, 1]} : vector<48x128xf32> to vector<16x16xf32>
    %17 = vector.extract_strided_slice %15 {offsets = [16, 16], sizes = [16, 16], strides = [1, 1]} : vector<48x128xf32> to vector<16x16xf32>
    %18 = vector.extract_strided_slice %15 {offsets = [32, 32], sizes = [16, 16], strides = [1, 1]} : vector<48x128xf32> to vector<16x16xf32>
    %cst_19 = arith.constant 0.000000e+00 : f32
    %19 = vector.broadcast %cst_19 : f32 to vector<16x80xf32>
    %20 = tpu.concatenate %16, %17, %18, %19 in 1 : vector<16x16xf32>, vector<16x16xf32>, vector<16x16xf32>, vector<16x80xf32> -> vector<16x128xf32>
    %c0_20 = arith.constant 0 : index
    %c0_21 = arith.constant 0 : index
    %c0_22 = arith.constant 0 : index
    %21 = vector.load %arg6[%c0_20, %c0_21, %c0_22] : memref<1x16x128xf32, #tpu.memory_space<vmem>>, vector<1x16x128xf32>
    %22 = vector.shape_cast %21 : vector<1x16x128xf32> to vector<16x128xf32>
    %23 = vector.shape_cast %20 : vector<16x128xf32> to vector<1x16x128xf32>
    tpu.vector_store %arg6[%c0_20, %c0_21, %c0_22], %23 {strides = array<i32>} : memref<1x16x128xf32, #tpu.memory_space<vmem>>, vector<1x16x128xf32>,
    return
  }
  func.func @transform_0(%arg0: i32) -> (i32, i32, i32) {
    %c0_i32 = arith.constant 0 : i32
    %c0_i32_0 = arith.constant 0 : i32
    %c0_i32_1 = arith.constant 0 : i32
    return %arg0, %c0_i32, %c0_i32_0 : i32, i32, i32
  }
  func.func @transform_1(%arg0: i32) -> (i32, i32, i32, i32) {
    %c0_i32 = arith.constant 0 : i32
    %c0_i32_0 = arith.constant 0 : i32
    %c0_i32_1 = arith.constant 0 : i32
    %c0_i32_2 = arith.constant 0 : i32
    return %arg0, %c0_i32, %c0_i32_0, %c0_i32_1 : i32, i32, i32, i32
  }
  func.func @transform_2(%arg0: i32) -> (i32, i32) {
    %c0_i32 = arith.constant 0 : i32
    %c0_i32_0 = arith.constant 0 : i32
    %c0_i32_1 = arith.constant 0 : i32
    return %c0_i32, %c0_i32_0 : i32, i32
  }
  func.func @transform_3(%arg0: i32) -> (i32, i32) {
    %c0_i32 = arith.constant 0 : i32
    %c0_i32_0 = arith.constant 0 : i32
    %c0_i32_1 = arith.constant 0 : i32
    return %c0_i32, %c0_i32_0 : i32, i32
  }
  func.func @transform_4(%arg0: i32) -> (i32, i32, i32) {
    %c0_i32 = arith.constant 0 : i32
    %c0_i32_0 = arith.constant 0 : i32
    %c0_i32_1 = arith.constant 0 : i32
    return %arg0, %c0_i32, %c0_i32_0 : i32, i32, i32
  }
  func.func @transform_5(%arg0: i32) -> (i32, i32, i32) {
    %c0_i32 = arith.constant 0 : i32
    %c0_i32_0 = arith.constant 0 : i32
    %c0_i32_1 = arith.constant 0 : i32
    return %arg0, %c0_i32, %c0_i32_0 : i32, i32, i32
  }
}

</mosaic_0001>

<bundles_post_ra>
// kernel: tpu_custom_call.1
= control target key start
LH: loop header
LB: loop body
LE: loop exit
PB: predicated region body
PF: predicated region fallthrough
CT: control target
= control target key end

     0   :  { %11 = vsyncpa [#allocation3], 0  ;;  %s1218_s0 = inlined_call_operand.vmem [shape: f32[2,4,81], index: 0, kind: input, shape index: {}]   ;;  %s1219_s1 = inlined_call_operand.vmem [shape: f32[2,4,81,81], index: 1, kind: input, shape index: {}]   ;;  %s1220_s2 = inlined_call_operand.vmem [shape: f32[48,81], index: 2, kind: input, shape index: {}]   ;;  %s1221_s3 = inlined_call_operand.vmem [shape: f32[81,128], index: 3, kind: input, shape index: {}]   ;;  %s1222_s4 = inlined_call_operand.hbm [shape: f32[2,1,128], index: 4, kind: output, shape index: {0}]   ;;  %s1223_s5 = inlined_call_operand.hbm [shape: f32[2,16,128], index: 5, kind: output, shape index: {1}]  }
   0x1   :  { %13 = vsyncpa [#allocation3 + $0x1], 0 }
   0x2   :  { %14 = vsyncpa [#allocation5], 0 }
   0x3   :  { %16 = vsyncpa [#allocation5 + $0x1], 0  ;;  %s933_s18 = smov 0   ;;  %s935_s19 = smov 0  }
   0x4   :  { %s937_s20 = smov 0   ;;  %s939_s21 = smov 0  }
   0x5 LB: > { %s954_s22 = sadd.s32 4294967295, %s899_s21   ;;  %s696_s23 = sadd.s32 4294967294, %s899_s21   ;;  %s899_s21 = sphi %s939_s21, %s1229_s21   ;;  %s895_s20 = sphi %s937_s20, %s1228_s20   ;;  %s891_s19 = sphi %s935_s19, %s1227_s19   ;;  %s887_s18 = sphi %s933_s18, %s1226_s18  }
   0x6   : > { %s958_s24 = sadd.s32 1, %s899_s21   ;;  %s123_s25 = sadd.s32 1, %s895_s20 }
   0x7   : > { %s120_s26 = ssub.s32 %s899_s21, %s958_s24  ;;  %p133_p0 = scmp.ne.s32.totalorder %s895_s20, %s891_s19 }
   0x8   : > { %p121_p1 = scmp.eq.s32.totalorder %s120_s26, 0  ;;  %p134_p2 = scmp.eq.s32.totalorder %s954_s22, 1 }
   0x9   : > { %p139_p3 = scmp.ne.s32.totalorder %s891_s19, %s887_s18  ;;  %p140_p4 = scmp.eq.s32.totalorder %s696_s23, 1 }
   0xa   : > { %s969_s27 = scalar_select %p121_p1, %s895_s20, %s123_s25  }
   0xb   : > { %p971_p5 = por %p134_p2, %p133_p0  ;;  %p975_p6 = por %p140_p4, %p139_p3 }
   0xc   : > { %p699_p7 = scmp.ge.s32.totalorder %s899_s21, 1  ;;  %p205_p8 = scmp.lt.s32.totalorder %s899_s21, 3 }
   0xe   : > { %p206_p9 = pnand %p699_p7, %p205_p8 }
   0xf   : > { %p241_p10 = scmp.lt.s32.totalorder (!%p206_p9), %s954_s22, 1  ;;  %s1161_s23 = sand.u32 (!%p206_p9), 1, %s891_s19  }
  0x10   : > { %209 = sbr.rel (%p206_p9) target bundleno = 351 (0x15f), region = 36  ;;  %s233_s25 = scalar_lea.vmem (!%p206_p9), [#allocation2], %s1161_s23 }
  0x11   : > { %s577_s26 = sshll.u32 (!%p206_p9), %s233_s25, 4  ;;  %s575_s7 = scalar_lea.hbm (!%p206_p9), %s1222_s4, %s954_s22  ;;  %s578_s26 = int_to_ptr.vmem [resolvable:$true] %s577_s26 }
  0x12   : > { %s579_s8 = sshll.u32 (!%p206_p9), %s575_s7, 4  ;;  %s825_s14 = scalar_lea.hbm (!%p206_p9), %s1222_s4, 2  ;;  %s580_s8 = int_to_ptr.hbm [resolvable:$true] %s579_s8 }
  0x15   : > { %s983_s30 = scalar_select %p241_p10, %s954_s22, 1  ;;  %vm413_vm0 = vcmask 655360   ;;  %vm270_vm1 = vcmask 662528   ;;  %vm274_vm2 = vcmask 1040384   ;;  %vm251_vm3 = vcmask 658432  }
  0x17   : > { %s758_s6 = smul.u32 352, %s983_s30  ;;  %s701_s10 = sshll.u32 %s983_s30, 2 }
  0x18   : > { %s244_s17 = scalar_lea.vmem %s1218_s0, %s701_s10  ;;  %s819_s10 = sshra.s32 %s580_s8, 4  ;;  %s820_s10 = int_to_ptr.hbm [resolvable:$true] %s819_s10 }
  0x19   : > { %s989_s9 = scalar_lea.vmem %s1219_s1, %s758_s6  ;;  %s821_s11 = scalar_lea.hbm %s820_s10, 1 }
  0x1a   : > { %v309_v0 = vld [vmem:[%s989_s9 + $0x50] sm:$0x1]  ;;  %v320_v1 = vld [vmem:[%s989_s9 + $0xa8] sm:$0x1]  ;;  %v331_v2 = vld [vmem:[%s989_s9 + $0x100] sm:$0x1]  ;;  %p822_p11 = scmp.ne.s32.totalorder %s820_s10, %s821_s11  ;;  %p826_p0 = scmp.lt.s32.totalorder %s820_s10, %s1222_s4 }
  0x1b   : > { %v342_v3 = vld [vmem:[%s989_s9 + $0x158] sm:$0x1]  ;;  %v414_v4 = vsel %vm413_vm0, %v309_v0, 0.0  ;;  %v415_v5 = vsel %vm413_vm0, %v320_v1, 0.0  ;;  %v417_v6 = vsel %vm413_vm0, %v331_v2, 0.0  ;;  %v308_v7 = vld [vmem:[%s989_s9 + $0x48] sm:$0xff]  ;;  %p827_p1 = scmp.lt.s32.totalorder %s825_s14, %s821_s11 }
  0x1c   : > { %v416_v8 = vadd.f32 %v415_v5, %v414_v4  ;;  %v419_v9 = vsel %vm413_vm0, %v342_v3, 0.0  ;;  %v319_v10 = vld [vmem:[%s989_s9 + $0xa0] sm:$0xff]  ;;  %v330_v11 = vld [vmem:[%s989_s9 + $0xf8] sm:$0xff]  ;;  %v341_v12 = vld [vmem:[%s989_s9 + $0x150] sm:$0xff]  ;;  %v406_v13 = vsel %vm270_vm1, %v308_v7, 0.0  ;;  %p823_p12 = pnand %p822_p11, %p971_p5 }
  0x1d   : > { %v407_v14 = vsel %vm270_vm1, %v319_v10, 0.0  ;;  %v409_v15 = vsel %vm270_vm1, %v330_v11, 0.0  ;;  %v411_v16 = vsel %vm270_vm1, %v341_v12, 0.0  ;;  %v307_v17 = vld [vmem:[%s989_s9 + $0x40] sm:$0xff]  ;;  %v318_v18 = vld [vmem:[%s989_s9 + $0x98] sm:$0xff]  ;;  %v329_v19 = vld [vmem:[%s989_s9 + $0xf0] sm:$0xff]  ;;  %p828_p2 = por %p827_p1, %p826_p0 }
  0x1e   : > { %v418_v20 = vadd.f32 %v417_v6, %v416_v8  ;;  %v408_v21 = vadd.f32 %v407_v14, %v406_v13  ;;  %v340_v22 = vld [vmem:[%s989_s9 + $0x148] sm:$0xff]  ;;  %v399_v23 = vsel %vm270_vm1, %v307_v17, 0.0  ;;  %v400_v24 = vsel %vm270_vm1, %v318_v18, 0.0  ;;  %v306_v25 = vld [vmem:[%s989_s9 + $0x38] sm:$0xff]  ;;  %v317_v26 = vld [vmem:[%s989_s9 + $0x90] sm:$0xff]  ;;  %p824_p13 = pneg %p823_p12 }
  0x1f   : > { %v401_v27 = vadd.f32 %v400_v24, %v399_v23  ;;  %v402_v28 = vsel %vm270_vm1, %v329_v19, 0.0  ;;  %v404_v29 = vsel %vm270_vm1, %v340_v22, 0.0  ;;  %v328_v30 = vld [vmem:[%s989_s9 + $0xe8] sm:$0xff]  ;;  %v339_v31 = vld [vmem:[%s989_s9 + $0x140] sm:$0xff]  ;;  %v392_v32 = vsel %vm270_vm1, %v306_v25, 0.0  ;;  %v305_v33 = vld [vmem:[%s989_s9 + $0x30] sm:$0xff] }
  0x20   : > { %v420_v34 = vadd.f32 %v419_v9, %v418_v20  ;;  %v410_v35 = vadd.f32 %v409_v15, %v408_v21  ;;  %v393_v36 = vsel %vm270_vm1, %v317_v26, 0.0  ;;  %v395_v37 = vsel %vm270_vm1, %v328_v30, 0.0  ;;  %v316_v38 = vld [vmem:[%s989_s9 + $0x88] sm:$0xff]  ;;  %v327_v39 = vld [vmem:[%s989_s9 + $0xe0] sm:$0xff]  ;;  %v338_v40 = vld [vmem:[%s989_s9 + $0x138] sm:$0xff]  ;;  %p829_p3 = pnand %p828_p2, %p824_p13 }
  0x21   : > { %v403_v41 = vadd.f32 %v402_v28, %v401_v27  ;;  %v394_v42 = vadd.f32 %v393_v36, %v392_v32  ;;  %v397_v43 = vsel %vm270_vm1, %v339_v31, 0.0  ;;  %v385_v44 = vsel %vm270_vm1, %v305_v33, 0.0  ;;  %v304_v45 = vld [vmem:[%s989_s9 + $0x28] sm:$0xff]  ;;  %v315_v46 = vld [vmem:[%s989_s9 + $0x80] sm:$0xff]  ;;  %v326_v47 = vld [vmem:[%s989_s9 + $0xd8] sm:$0xff] }
  0x22   : > { %705 = vmatpush.msk.msra.mxu1 %vm274_vm2, %v420_v34  ;;  %v412_v48 = vadd.f32 %v411_v16, %v410_v35  ;;  %v386_v49 = vsel %vm270_vm1, %v316_v38, 0.0  ;;  %v388_v50 = vsel %vm270_vm1, %v327_v39, 0.0  ;;  %v390_v51 = vsel %vm270_vm1, %v338_v40, 0.0  ;;  %v337_v52 = vld [vmem:[%s989_s9 + $0x130] sm:$0xff]  ;;  %725 = vmatpush.msk.msra.mxu3 %vm274_vm2, %v420_v34  ;;  %v303_v53 = vld [vmem:[%s989_s9 + $0x20] sm:$0xff]  ;;  %v314_v54 = vld [vmem:[%s989_s9 + $0x78] sm:$0xff] }
  0x23   : > { %v405_v55 = vadd.f32 %v404_v29, %v403_v41  ;;  %v396_v56 = vadd.f32 %v395_v37, %v394_v42  ;;  %v387_v57 = vadd.f32 %v386_v49, %v385_v44  ;;  %v378_v58 = vsel %vm270_vm1, %v304_v45, 0.0  ;;  %v325_v59 = vld [vmem:[%s989_s9 + $0xd0] sm:$0xff]  ;;  %v336_v60 = vld [vmem:[%s989_s9 + $0x128] sm:$0xff]  ;;  %v302_v61 = vld [vmem:[%s989_s9 + $0x18] sm:$0xff] }
  0x24   : > { %454 = vmatpush.msra.mxu1 %v412_v48  ;;  %v379_v62 = vsel %vm270_vm1, %v315_v46, 0.0  ;;  %v381_v63 = vsel %vm270_vm1, %v326_v47, 0.0  ;;  %v383_v0 = vsel %vm270_vm1, %v337_v52, 0.0  ;;  %v371_v1 = vsel %vm270_vm1, %v303_v53, 0.0  ;;  %726 = vmatpush.msra.mxu3 %v412_v48  ;;  %v313_v2 = vld [vmem:[%s989_s9 + $0x70] sm:$0xff]  ;;  %v324_v3 = vld [vmem:[%s989_s9 + $0xc8] sm:$0xff] }
  0x25   : > { %v398_v4 = vadd.f32 %v397_v43, %v396_v56  ;;  %v389_v5 = vadd.f32 %v388_v50, %v387_v57  ;;  %v380_v6 = vadd.f32 %v379_v62, %v378_v58  ;;  %v372_v7 = vsel %vm270_vm1, %v314_v54, 0.0  ;;  %v301_v8 = vld [vmem:[%s989_s9 + $0x10] sm:$0xff]  ;;  %v335_v12 = vld [vmem:[%s989_s9 + $0x120] sm:$0xff]  ;;  %v312_v14 = vld [vmem:[%s989_s9 + $0x68] sm:$0xff] }
  0x26   : > { %455 = vmatpush.msra.mxu1 %v405_v55  ;;  %v373_v9 = vadd.f32 %v372_v7, %v371_v1  ;;  %v374_v10 = vsel %vm270_vm1, %v325_v59, 0.0  ;;  %v376_v11 = vsel %vm270_vm1, %v336_v60, 0.0  ;;  %v364_v13 = vsel %vm270_vm1, %v302_v61, 0.0  ;;  %727 = vmatpush.msra.mxu3 %v405_v55  ;;  %v323_v15 = vld [vmem:[%s989_s9 + $0xc0] sm:$0xff]  ;;  %v334_v20 = vld [vmem:[%s989_s9 + $0x118] sm:$0xff]  ;;  %v300_v21 = vld [vmem:[%s989_s9 + $0x8] sm:$0xff] }
  0x27   : > { %v391_v16 = vadd.f32 %v390_v51, %v389_v5  ;;  %v382_v17 = vadd.f32 %v381_v63, %v380_v6  ;;  %v365_v18 = vsel %vm270_vm1, %v313_v2, 0.0  ;;  %v367_v19 = vsel %vm270_vm1, %v324_v3, 0.0  ;;  %v311_v25 = vld [vmem:[%s989_s9 + $0x60] sm:$0xff]  ;;  %v322_v26 = vld [vmem:[%s989_s9 + $0xb8] sm:$0xff]  ;;  %v333_v36 = vld [vmem:[%s989_s9 + $0x110] sm:$0xff] }
  0x28   : > { %456 = vmatpush.msra.mxu1 %v398_v4  ;;  %v375_v22 = vadd.f32 %v374_v10, %v373_v9  ;;  %v366_v23 = vadd.f32 %v365_v18, %v364_v13  ;;  %v357_v24 = vsel %vm270_vm1, %v301_v8, 0.0  ;;  %728 = vmatpush.msra.mxu3 %v398_v4  ;;  %v299_v27 = vld [vmem:[%s989_s9] sm:$0xff]  ;;  %v369_v29 = vsel %vm270_vm1, %v335_v12, 0.0  ;;  %v310_v32 = vld [vmem:[%s989_s9 + $0x58] sm:$0xff]  ;;  %v321_v38 = vld [vmem:[%s989_s9 + $0xb0] sm:$0xff] }
  0x29   : > { %v384_v28 = vadd.f32 %v383_v0, %v382_v17  ;;  %v358_v30 = vsel %vm270_vm1, %v312_v14, 0.0  ;;  %v360_v31 = vsel %vm270_vm1, %v323_v15, 0.0  ;;  %v350_v37 = vsel %vm270_vm1, %v300_v21, 0.0  ;;  %v332_v46 = vld [vmem:[%s989_s9 + $0x108] sm:$0xff]  ;;  %v269_v55 = vld [vmem:[%s1221_s3 + $0x50] sm:$0x1] }
  0x2a   : > { %457 = vmatpush.msra.mxu1 %v391_v16  ;;  %v377_v33 = vadd.f32 %v376_v11, %v375_v22  ;;  %v368_v34 = vadd.f32 %v367_v19, %v366_v23  ;;  %v359_v35 = vadd.f32 %v358_v30, %v357_v24  ;;  %729 = vmatpush.msra.mxu3 %v391_v16  ;;  %v362_v39 = vsel %vm270_vm1, %v334_v20, 0.0  ;;  %v1084_v57 = vld [vmem:[%s1221_s3 + $0x48] sm:$0xff]  ;;  %v1093_v59 = vld [vmem:[%s1221_s3 + $0x40] sm:$0xff]  ;;  %v493_v60 = vld [vmem:[%s1221_s3 + $0x50] sm:$0x1]  ;;  %s562_s9 = scalar_lea.sflag [#allocation3], %s1161_s23 }
  0x2b   : > { %v351_v40 = vsel %vm270_vm1, %v311_v25, 0.0  ;;  %v353_v41 = vsel %vm270_vm1, %v322_v26, 0.0  ;;  %v343_v42 = vsel %vm270_vm1, %v299_v27, 0.0  ;;  %v344_v47 = vsel %vm270_vm1, %v310_v32, 0.0  ;;  %703 = vmatpush.msk.msra.mxu0 %vm274_vm2, %v269_v55  ;;  %736 = vmatpush.msk.msra.mxu2 %vm274_vm2, %v493_v60  ;;  %v250_v61 = vld [vmem:[%s244_s17] sm:$0xf] }
  0x2c   : > { %458 = vmatpush.msra.mxu1 %v384_v28  ;;  %v370_v43 = vadd.f32 %v369_v29, %v368_v34  ;;  %v361_v44 = vadd.f32 %v360_v31, %v359_v35  ;;  %v352_v45 = vadd.f32 %v351_v40, %v350_v37  ;;  %730 = vmatpush.msra.mxu3 %v384_v28  ;;  %v355_v48 = vsel %vm270_vm1, %v333_v36, 0.0  ;;  %v421_v62 = vld [vmem:[%s1220_s2] sm:$0xff]  ;;  %v266_v1 = vld [vmem:[%s1221_s3 + $0x38] sm:$0xff]  ;;  %v265_v3 = vld [vmem:[%s1221_s3 + $0x30] sm:$0xff] }
  0x2d   : > { %v345_v49 = vadd.f32 %v344_v47, %v343_v42  ;;  %v346_v50 = vsel %vm270_vm1, %v321_v38, 0.0  ;;  %v348_v54 = vsel %vm270_vm1, %v332_v46, 0.0  ;;  %284 = vmatpush.msra.mxu0 %v1084_v57  ;;  %v425_v63 = vld [vmem:[%s1220_s2 + $0x20] sm:$0xff]  ;;  %v252_v0 = vsel %vm251_vm3, %v250_v61, 0.0  ;;  %738 = vmatpush.msra.mxu2 %v1084_v57  ;;  %v264_v5 = vld [vmem:[%s1221_s3 + $0x28] sm:$0xff]  ;;  %v262_v11 = vld [vmem:[%s1221_s3 + $0x18] sm:$0xff] }
  0x2e   : > { %459 = vmatpush.msra.mxu1 %v377_v33  ;;  %v363_v51 = vadd.f32 %v362_v39, %v361_v44  ;;  %v354_v52 = vadd.f32 %v353_v41, %v352_v45  ;;  %731 = vmatpush.msra.mxu3 %v377_v33  ;;  %v253_v2 = vrot.slane %v252_v0, 4  ;;  %v263_v7 = vld [vmem:[%s1221_s3 + $0x20] sm:$0xff]  ;;  %v422_v8 = vld [vmem:[%s1220_s2 + $0x8] sm:$0xff]  ;;  %v261_v12 = vld [vmem:[%s1221_s3 + $0x10] sm:$0xff] }
  0x2f   : > { %v347_v53 = vadd.f32 %v346_v50, %v345_v49  ;;  %285 = vmatpush.msra.mxu0 %v1093_v59  ;;  %740 = vmatpush.msra.mxu2 %v1093_v59  ;;  %v426_v9 = vld [vmem:[%s1220_s2 + $0x28] sm:$0xff]  ;;  %v259_v15 = vld [vmem:[%s1221_s3] sm:$0xff]  ;;  %v423_v16 = vld [vmem:[%s1220_s2 + $0x10] sm:$0xff] }
  0x30   : > { %460 = vmatpush.msra.mxu1 %v370_v43  ;;  %v356_v56 = vadd.f32 %v355_v48, %v354_v52  ;;  %732 = vmatpush.msra.mxu3 %v370_v43  ;;  %v254_v4 = vadd.f32 %v253_v2, %v252_v0  ;;  %v260_v14 = vld [vmem:[%s1221_s3 + $0x8] sm:$0xff]  ;;  %v424_v18 = vld [vmem:[%s1220_s2 + $0x18] sm:$0xff] }
  0x31   : > { %v349_v58 = vadd.f32 %v348_v54, %v347_v53  ;;  %286 = vmatpush.msra.mxu0 %v266_v1  ;;  %742 = vmatpush.msra.mxu2 %v266_v1 }
  0x32   : > { %461 = vmatpush.msra.mxu1 %v363_v51  ;;  %733 = vmatpush.msra.mxu3 %v363_v51  ;;  %v255_v6 = vrot.slane %v254_v4, 2 }
  0x33   : > { %287 = vmatpush.msra.mxu0 %v265_v3  ;;  %744 = vmatpush.msra.mxu2 %v265_v3 }
  0x34   : > { %462 = vmatpush.msra.mxu1 %v356_v56  ;;  %734 = vmatpush.msra.mxu3 %v356_v56  ;;  %v256_v10 = vadd.f32 %v255_v6, %v254_v4 }
  0x35   : > { %288 = vmatpush.msra.mxu0 %v264_v5  ;;  %746 = vmatpush.msra.mxu2 %v264_v5 }
  0x36   : > { %463 = vmatpush.msra.mxu1 %v349_v58  ;;  %735 = vmatpush.msra.mxu3 %v349_v58  ;;  %v257_v13 = vrot.slane %v256_v10, 1 }
  0x37   : > { %706 = vmatmul.msk.f32.vlgmr.msra.gmra.mxu1 %vm270_vm1, %v421_v62  ;;  %710 = vmatmul.msk.f32.vlgmr.msra.gmra.mxu3 %vm270_vm1, %v425_v63 }
  0x38   : > { %737 = vmatpush.msk.msrb.mxu3 %vm274_vm2, %v493_v60  ;;  %289 = vmatpush.msra.mxu0 %v263_v7  ;;  %v258_v17 = vadd.f32 %v257_v13, %v256_v10 }
  0x39   : > { %748 = vmatpush.msra.mxu2 %v263_v7 }
  0x3a   : > { %739 = vmatpush.msrb.mxu3 %v1084_v57  ;;  %290 = vmatpush.msra.mxu0 %v262_v11 }
  0x3b   : > { %750 = vmatpush.msra.mxu2 %v262_v11 }
  0x3c   : > { %741 = vmatpush.msrb.mxu3 %v1093_v59  ;;  %291 = vmatpush.msra.mxu0 %v261_v12 }
  0x3d   : > { %752 = vmatpush.msra.mxu2 %v261_v12 }
  0x3e   : > { %743 = vmatpush.msrb.mxu3 %v266_v1  ;;  %292 = vmatpush.msra.mxu0 %v260_v14 }
  0x3f   : > { %707 = vmatmul.msk.f32.gmra.mxu1 %vm270_vm1, %v422_v8  ;;  %711 = vmatmul.msk.f32.gmra.mxu3 %vm270_vm1, %v426_v9 }
  0x40   : > { %745 = vmatpush.msrb.mxu3 %v265_v3  ;;  %293 = vmatpush.msra.mxu0 %v259_v15 }
  0x41   : > { %754 = vmatpush.msra.mxu2 %v260_v14  ;;  %704 = vmatmul.msk.f32.vlgmr.msra.gmra.mxu0 %vm270_vm1, %v258_v17 }
  0x42   : > { %747 = vmatpush.msrb.mxu3 %v264_v5  ;;  %712 = vmatpush.msk.msrb.mxu0 %vm274_vm2, %v493_v60 }
  0x43   : > { %756 = vmatpush.msra.mxu2 %v259_v15 }
  0x44   : > { %521 = vmatpush.msrb.mxu0 %v1084_v57  ;;  %749 = vmatpush.msrb.mxu3 %v263_v7 }
  0x46   : > { %522 = vmatpush.msrb.mxu0 %v1093_v59  ;;  %751 = vmatpush.msrb.mxu3 %v262_v11 }
  0x47   : > { %708 = vmatmul.msk.f32.gmra.mxu1 %vm270_vm1, %v423_v16 }
  0x48   : > { %523 = vmatpush.msrb.mxu0 %v266_v1  ;;  %753 = vmatpush.msrb.mxu3 %v261_v12 }
  0x4a   : > { %524 = vmatpush.msrb.mxu0 %v265_v3  ;;  %755 = vmatpush.msrb.mxu3 %v260_v14 }
  0x4c   : > { %525 = vmatpush.msrb.mxu0 %v264_v5  ;;  %757 = vmatpush.msrb.mxu3 %v259_v15 }
  0x4e   : > { %526 = vmatpush.msrb.mxu0 %v263_v7 }
  0x4f   : > { %709 = vmatmul.msk.f32.gmra.mxu1 %vm270_vm1, %v424_v18 }
  0x50   : > { %527 = vmatpush.msrb.mxu0 %v262_v11 }
  0x52   : > { %528 = vmatpush.msrb.mxu0 %v261_v12 }
  0x54   : > { %529 = vmatpush.msrb.mxu0 %v260_v14 }
  0x56   : > { %530 = vmatpush.msrb.mxu0 %v259_v15 }
  0xb4   : > { %v465_v19 = vpop.f32.mrf.mxu1 }
  0xb5   : > { %713 = vmatmul.msk.f32.vlgmr.msrb.gmra.mxu0 %vm270_vm1, %v465_v19 }
  0xba   : > { %v477_v20 = vpop.f32.mrf.mxu3 }
  0xbc   : > { %v468_v21 = vpop.f32.mrf.mxu1 }
  0xbd   : > { %714 = vmatmul.msk.f32.vlgmr.msra.gmra.mxu2 %vm270_vm1, %v468_v21 }
  0xbe   : > { %v295_v24 = vpop.f32.mrf.mxu0 }
  0xbf   : > { %298 = vst [vmem:[%s233_s25] sm:$0x1] %v295_v24 }
  0xc2   : > { %v480_v22 = vpop.f32.mrf.mxu3 }
  0xc3   : > { %718 = vmatmul.msk.f32.vlgmr.msrb.gmra.mxu3 %vm270_vm1, %v480_v22 }
  0xc4   : > { %v471_v23 = vpop.f32.mrf.mxu1 }
  0xc5   : > { %715 = vmatmul.msk.f32.gmra.mxu2 %vm270_vm1, %v471_v23 }
  0xcc   : > { %v474_v25 = vpop.f32.mrf.mxu1 }
  0xcd   : > { %716 = vmatmul.msk.f32.gmra.mxu2 %vm270_vm1, %v474_v25 }
  0xd5   : > { %717 = vmatmul.msk.f32.gmra.mxu2 %vm270_vm1, %v477_v20 }
  0xd6   : > { %832 = shalt.err (!%p829_p3)
}
  0xd7   : > { %759 = dma.vmem_to_hbm [thread:$0]  (%p971_p5), %s578_s26, 16, %s580_s8, %s562_s9   ;;  %vm553_vm4 = vcmask 261120   ;;  %vm550_vm5 = vcmask 130048   ;;  %vm556_vm6 = vcmask 392192  }
  0xd8   : > { %s700_s17 = sshll.u32 %s1161_s23, 4  ;;  %s724_s25 = sshll.u32 %s954_s22, 4 }
  0xd9   : > { %s590_s7 = scalar_lea.hbm %s1223_s5, %s724_s25  ;;  %s240_s10 = scalar_lea.vmem [#allocation4], %s700_s17 }
  0xda   : > { %s591_s26 = sshll.u32 %s240_s10, 4  ;;  %s593_s8 = sshll.u32 %s590_s7, 4  ;;  %s592_s26 = int_to_ptr.vmem [resolvable:$true] %s591_s26  ;;  %s594_s8 = int_to_ptr.hbm [resolvable:$true] %s593_s8 }
  0xdb   : > { %s566_s22 = scalar_lea.sflag [#allocation5], %s1161_s23  ;;  %s847_s9 = sshra.s32 %s594_s8, 4  ;;  %s848_s9 = int_to_ptr.hbm [resolvable:$true] %s847_s9 }
  0xdc   : > { %s849_s11 = scalar_lea.hbm %s848_s9, 16  ;;  %s853_s14 = scalar_lea.hbm %s1223_s5, 32 }
  0xdd   : > { %p850_p4 = scmp.ne.s32.totalorder %s848_s9, %s849_s11  ;;  %p854_p9 = scmp.lt.s32.totalorder %s848_s9, %s1223_s5 }
  0xde   : > { %p855_p10 = scmp.lt.s32.totalorder %s853_s14, %s849_s11 }
  0xdf   : > { %p851_p7 = pnand %p850_p4, %p971_p5 }
  0xe0   : > { %p856_p11 = por %p855_p10, %p854_p9 }
  0xe1   : > { %p852_p8 = pneg %p851_p7 }
  0xe3   : > { %p857_p12 = pnand %p856_p11, %p852_p8 }
 0x132   : > { %v532_v33 = vpop.f32.mrf.mxu0 }
 0x140   : > { %v535_v26 = vpop.f32.mrf.mxu2 }
 0x146   : > { %v547_v28 = vpop.f32.mrf.mxu3 }
 0x148   : > { %v538_v27 = vpop.f32.mrf.mxu2 }
 0x149   : > { %v551_v34 = vsel %vm550_vm5, %v532_v33, %v538_v27 }
 0x150   : > { %v541_v29 = vpop.f32.mrf.mxu2 }
 0x151   : > { %v552_v30 = vsel %vm550_vm5, %v535_v26, %v541_v29 }
 0x152   : > { %v555_v31 = vsel %vm553_vm4, %v552_v30, %v547_v28 }
 0x153   : > { %v558_v32 = vsel %vm556_vm6, %v555_v31, 0.0 }
 0x154   : > { %560 = vst [vmem:[%s240_s10 + $0x8] sm:$0xff] %v558_v32 }
 0x158   : > { %v544_v35 = vpop.f32.mrf.mxu2 }
 0x159   : > { %v554_v36 = vsel %vm553_vm4, %v551_v34, %v544_v35 }
 0x15a   : > { %v557_v37 = vsel %vm556_vm6, %v554_v36, 0.0 }
 0x15b   : > { %559 = vst [vmem:[%s240_s10] sm:$0xff] %v557_v37 }
 0x15c   : > { %860 = shalt.err (!%p857_p12)
}
 0x15d   : > { %s901_s23 = smov 128   ;;  %s902_s17 = smov 8  }
 0x15e   : > { %760 = dma.vmem_to_hbm [thread:$0]  (%p971_p5), %s592_s26, 256, %s594_s8, %s566_s22, %s901_s23, %s901_s23, %s902_s17  }
 0x15f PF: > { %p770_p13 = scmp.ge.s32.totalorder %s899_s21, 2  ;;  %s608_s25 = sand.u32 1, %s887_s18  }
 0x160   : > { %s609_s30 = scalar_lea.sflag [#allocation3], %s608_s25 }
 0x161   : > { %p764_p0 = pnand %p770_p13, %p975_p6 }
 0x163   : > { %p765_p1 = pneg %p764_p0 }
 0x165   : > { %878 = dma.done.wait (%p765_p1), %s609_s30, 16  }
 0x166   : > { %880 = vsyncadd (%p765_p1), %s609_s30, 4294967280  ;;  %s618_s6 = scalar_lea.sflag [#allocation5], %s608_s25 }
 0x167   : > { %882 = dma.done.wait (%p765_p1), %s618_s6, 256  }
 0x168   : > { %884 = vsyncadd (%p765_p1), %s618_s6, 4294967040  ;;  %p19_p5 = scmp.ge.s32.totalorder %s958_s24, 4   ;;  %s1226_s18 = smov %s891_s19 }
 0x169   : > { %s1227_s19 = smov %s895_s20  ;;  %s1228_s20 = smov %s969_s27 }
 0x16a   : > { %s1229_s21 = smov %s958_s24  ;;  %21 = sbr.rel (!%p19_p5) target bundleno = 5 (0x5), region = 91 }
 0x16f   :  { %624 = vsyncpa [#allocation3], 1 }
 0x170   :  { %626 = vsyncpa [#allocation3 + $0x1], 1 }
 0x171   :  { %627 = vsyncpa [#allocation5], 1 }
 0x172   :  { %629 = vsyncpa [#allocation5 + $0x1], 1 }

</bundles_post_ra>
